<compile_context>
chip_gen: v6e
topology: v6e:2x2x1
jax: 0.10.0
libtpu: 0.0.40
codegen_flags: <defaults>
</compile_context>

<pallas_src>
import functools

import jax
import jax.numpy as jnp
from jax.experimental import pallas as pl
from jax.experimental.pallas import tpu as pltpu


def _mlp_kernel(x_ref, w0_ref, b0_ref, w1_ref, b1_ref, w2_ref, b2_ref, o_ref):
    """Whole 3-layer MLP (depth=2) fused in one kernel body, transposed layout.

    x_ref : (in_num, T)    bf16 (or f32 fallback)  -- batch on the lane axis
    wK    : (out_f, in_f)  bf16 (or f32)           -- PyTorch nn.Linear layout
    bK    : (out_f, 1)     f32
    o_ref : (out_num, T)   f32
    Matmuls run on the MXU with f32 accumulation; tanh goes to the EUP;
    bias-add / residual stay in f32 on the VPU.
    """
    mm = w0_ref.dtype                     # matmul operand dtype (bf16 or f32)
    x = x_ref[...]                        # (in_num, T)

    # layer 0: Linear + Tanh
    h1 = jnp.tanh(
        jnp.dot(w0_ref[...], x, preferred_element_type=jnp.float32) + b0_ref[...]
    )                                     # (hid, T) f32

    # layer 1: Linear + residual (use_res and 0 < layer_idx < depth) + Tanh
    h2 = jnp.tanh(
        jnp.dot(w1_ref[...], h1.astype(mm), preferred_element_type=jnp.float32)
        + b1_ref[...]
        + h1
    )                                     # (hid, T) f32

    # layer 2: Linear + Identity (activate_last_layer=False)
    y = jnp.dot(w2_ref[...], h2.astype(mm), preferred_element_type=jnp.float32) + b2_ref[...]
    o_ref[...] = y.astype(o_ref.dtype)    # (out_num, T) -- lane-dense store


def _round_up(n, m):
    return -(-n // m) * m


@functools.partial(jax.jit, static_argnames=("batch_tile", "use_bf16"))
def mlp_forward(x, params, *, batch_tile=512, use_bf16=True):
    """Runs the fused MLP Pallas kernel.

    x:      (B, in_num) float32 (aligned inputs, +-1 for base vectors)
    params: dict with w0 (hid,in), b0 (hid,), w1 (hid,hid), b1 (hid,),
            w2 (out,hid), b2 (out,)   -- PyTorch nn.Linear layout.
    """
    w0, b0 = params["w0"], params["b0"]
    w1, b1 = params["w1"], params["b1"]
    w2, b2 = params["w2"], params["b2"]
    B, in_num = x.shape
    hid = w0.shape[0]
    out_num = w2.shape[0]

    # Effective batch tile: multiple of 128 (full sublane groups on every MXU
    # generation), no larger than the padded batch.  Default 512 keeps the
    # double-buffered tiles tiny (<< 32 MiB scoped VMEM even on v7x) while
    # amortizing the ~0.35 us per-grid-step overhead.
    tile = min(batch_tile, _round_up(B, 128))
    tile = max(128, _round_up(tile, 128))
    B_pad = _round_up(B, tile)

    mm_dtype = jnp.bfloat16 if use_bf16 else jnp.float32

    # Transposed, padded input: (in_num, B_pad) -- batch on the (fast) lane axis.
    x_t = jnp.pad(x, ((0, B_pad - B), (0, 0))).T.astype(mm_dtype)

    w0m = w0.astype(mm_dtype)
    w1m = w1.astype(mm_dtype)
    w2m = w2.astype(mm_dtype)
    b0c = b0.reshape(hid, 1).astype(jnp.float32)
    b1c = b1.reshape(hid, 1).astype(jnp.float32)
    b2c = b2.reshape(out_num, 1).astype(jnp.float32)

    grid = (B_pad // tile,)

    # Weights/biases are grid-invariant (constant index_map); they could also be
    # single-buffered (pl.Buffered(1)) but at <10 KiB total the default is fine.
    full = lambda shape: pl.BlockSpec(shape, lambda i: (0, 0))

    flops = 2 * B_pad * (in_num * hid + hid * hid + hid * out_num)
    transcendentals = 2 * B_pad * hid
    bytes_accessed = (
        x_t.size * x_t.dtype.itemsize
        + B_pad * out_num * 4
        + sum(a.size * a.dtype.itemsize for a in (w0m, w1m, w2m, b0c, b1c, b2c))
    )

    out_t = pl.pallas_call(
        _mlp_kernel,
        out_shape=jax.ShapeDtypeStruct((out_num, B_pad), jnp.float32),
        grid=grid,
        in_specs=[
            pl.BlockSpec((in_num, tile), lambda i: (0, i)),  # x^T tile
            full((hid, in_num)),    # w0
            full((hid, 1)),         # b0
            full((hid, hid)),       # w1
            full((hid, 1)),         # b1
            full((out_num, hid)),   # w2
            full((out_num, 1)),     # b2
        ],
        out_specs=pl.BlockSpec((out_num, tile), lambda i: (0, i)),
        compiler_params=pltpu.CompilerParams(
            dimension_semantics=("parallel",),
        ),
        cost_estimate=pl.CostEstimate(
            flops=flops,
            transcendentals=transcendentals,
            bytes_accessed=bytes_accessed,
        ),
    )(x_t, w0m, b0c, w1m, b1c, w2m, b2c)

    # Back to (B, out_num); drop the batch padding.
    return out_t[:, :B].T.astype(x.dtype)


def init_params(key, in_num, hidden, out_num, dtype=jnp.float32):
    """Deterministic init mimicking torch.nn.Linear default (uniform +-1/sqrt(fan_in)).

    Weights stored in PyTorch layout: (out_features, in_features)."""
    keys = jax.random.split(key, 6)

    def lin(kw, kb, fan_in, fan_out):
        bound = 1.0 / jnp.sqrt(fan_in)
        w = jax.random.uniform(kw, (fan_out, fan_in), dtype, -bound, bound)
        b = jax.random.uniform(kb, (fan_out,), dtype, -bound, bound)
        return w, b

    w0, b0 = lin(keys[0], keys[1], in_num, hidden)
    w1, b1 = lin(keys[2], keys[3], hidden, hidden)
    w2, b2 = lin(keys[4], keys[5], hidden, out_num)
    return {"w0": w0, "b0": b0, "w1": w1, "b1": b1, "w2": w2, "b2": b2}


def mlp_reference(x, p):
    """Pure-JAX reference matching the PyTorch forward exactly (f32 weights)."""
    h1 = jnp.tanh(x @ p["w0"].T + p["b0"])
    h2 = jnp.tanh((h1 @ p["w1"].T + p["b1"]) + h1)   # residual only on layer 1
    return h2 @ p["w2"].T + p["b2"]                  # Identity on last layer


if __name__ == "__main__":
    key = jax.random.PRNGKey(0)
    k_x, k_p, k_x2 = jax.random.split(key, 3)

    in_num, hidden, out_num = 16, 64, 4
    params = init_params(k_p, in_num, hidden, out_num)

    # --- small correctness check, full-f32 path (tight tolerance) ---
    bits = jax.random.bernoulli(k_x, 0.5, (16, in_num))
    x_small = 1.0 - 2.0 * bits.astype(jnp.float32)   # aligned base vectors
    out_f32 = jax.block_until_ready(mlp_forward(x_small, params, use_bf16=False))
    ref_small = mlp_reference(x_small, params)
    assert out_f32.shape == (16, out_num)
    assert jnp.allclose(out_f32, ref_small, atol=1e-4, rtol=1e-4), "f32 path mismatch"

    # --- bf16 fast path, larger batch exercising multiple grid steps ---
    bits2 = jax.random.bernoulli(k_x2, 0.5, (1024, in_num))
    x_big = 1.0 - 2.0 * bits2.astype(jnp.float32)
    out_bf16 = jax.block_until_ready(mlp_forward(x_big, params))  # defaults: bf16, tile=512
    ref_big = mlp_reference(x_big, params)
    assert out_bf16.shape == (1024, out_num)
    assert jnp.allclose(out_bf16, ref_big, atol=5e-2, rtol=5e-2), "bf16 path mismatch"

    print("KERNEL_OK")
</pallas_src>

<mosaic_0001>
module attributes {stable_mosaic.version = 11 : i64} {
  func.func @_mlp_kernel(%arg0: i32, %arg1: memref<16x128xf32, #tpu.memory_space<vmem>>, %arg2: memref<64x16xf32, #tpu.memory_space<vmem>>, %arg3: memref<64x1xf32, #tpu.memory_space<vmem>>, %arg4: memref<64x64xf32, #tpu.memory_space<vmem>>, %arg5: memref<64x1xf32, #tpu.memory_space<vmem>>, %arg6: memref<4x64xf32, #tpu.memory_space<vmem>>, %arg7: memref<4x1xf32, #tpu.memory_space<vmem>>, %arg8: memref<4x128xf32, #tpu.memory_space<vmem>>) attributes {dimension_semantics = [#tpu.dimension_semantics<parallel>], iteration_bounds = array<i64: 1>, scalar_prefetch = 0 : i64, scratch_operands = 0 : i64, tpu.core_type = #tpu.core_type<tc>, window_params = [{transform_indices = @transform_0, window_bounds = array<i64: 16, 128>}, {pipeline_mode = #tpu.pipeline_mode<synchronous>, transform_indices = @transform_1, window_bounds = array<i64: 64, 16>}, {pipeline_mode = #tpu.pipeline_mode<synchronous>, transform_indices = @transform_2, window_bounds = array<i64: 64, 1>}, {pipeline_mode = #tpu.pipeline_mode<synchronous>, transform_indices = @transform_3, window_bounds = array<i64: 64, 64>}, {pipeline_mode = #tpu.pipeline_mode<synchronous>, transform_indices = @transform_4, window_bounds = array<i64: 64, 1>}, {pipeline_mode = #tpu.pipeline_mode<synchronous>, transform_indices = @transform_5, window_bounds = array<i64: 4, 64>}, {pipeline_mode = #tpu.pipeline_mode<synchronous>, transform_indices = @transform_6, window_bounds = array<i64: 4, 1>}, {transform_indices = @transform_7, window_bounds = array<i64: 4, 128>}]} {
    %c0 = arith.constant 0 : index
    %c0_0 = arith.constant 0 : index
    %0 = vector.load %arg1[%c0, %c0_0] : memref<16x128xf32, #tpu.memory_space<vmem>>, vector<16x128xf32>
    %c0_1 = arith.constant 0 : index
    %c0_2 = arith.constant 0 : index
    %1 = vector.load %arg2[%c0_1, %c0_2] : memref<64x16xf32, #tpu.memory_space<vmem>>, vector<64x16xf32>
    %cst = arith.constant dense<0.000000e+00> : vector<64x128xf32>
    %2 = tpu.matmul %1, %0, %cst {dimension_numbers = #tpu.dot_dimension_numbers<[1], [0], [0], [1], [0, 0, 1, 1], [], []>} : vector<64x16xf32>, vector<16x128xf32>, vector<64x128xf32> -> vector<64x128xf32>
    %c0_3 = arith.constant 0 : index
    %c0_4 = arith.constant 0 : index
    %3 = vector.load %arg3[%c0_3, %c0_4] : memref<64x1xf32, #tpu.memory_space<vmem>>, vector<64x1xf32>
    %4 = vector.broadcast %3 : vector<64x1xf32> to vector<64x128xf32>
    %5 = arith.addf %2, %4 : vector<64x128xf32>
    %6 = math.tanh %5 : vector<64x128xf32>
    %c0_5 = arith.constant 0 : index
    %c0_6 = arith.constant 0 : index
    %7 = vector.load %arg4[%c0_5, %c0_6] : memref<64x64xf32, #tpu.memory_space<vmem>>, vector<64x64xf32>
    %cst_7 = arith.constant dense<0.000000e+00> : vector<64x128xf32>
    %8 = tpu.matmul %7, %6, %cst_7 {dimension_numbers = #tpu.dot_dimension_numbers<[1], [0], [0], [1], [0, 0, 1, 1], [], []>} : vector<64x64xf32>, vector<64x128xf32>, vector<64x128xf32> -> vector<64x128xf32>
    %c0_8 = arith.constant 0 : index
    %c0_9 = arith.constant 0 : index
    %9 = vector.load %arg5[%c0_8, %c0_9] : memref<64x1xf32, #tpu.memory_space<vmem>>, vector<64x1xf32>
    %10 = vector.broadcast %9 : vector<64x1xf32> to vector<64x128xf32>
    %11 = arith.addf %8, %10 : vector<64x128xf32>
    %12 = arith.addf %11, %6 : vector<64x128xf32>
    %13 = math.tanh %12 : vector<64x128xf32>
    %c0_10 = arith.constant 0 : index
    %c0_11 = arith.constant 0 : index
    %14 = vector.load %arg6[%c0_10, %c0_11] : memref<4x64xf32, #tpu.memory_space<vmem>>, vector<4x64xf32>
    %cst_12 = arith.constant dense<0.000000e+00> : vector<4x128xf32>
    %15 = tpu.matmul %14, %13, %cst_12 {dimension_numbers = #tpu.dot_dimension_numbers<[1], [0], [0], [1], [0, 0, 1, 1], [], []>} : vector<4x64xf32>, vector<64x128xf32>, vector<4x128xf32> -> vector<4x128xf32>
    %c0_13 = arith.constant 0 : index
    %c0_14 = arith.constant 0 : index
    %16 = vector.load %arg7[%c0_13, %c0_14] : memref<4x1xf32, #tpu.memory_space<vmem>>, vector<4x1xf32>
    %17 = vector.broadcast %16 : vector<4x1xf32> to vector<4x128xf32>
    %18 = arith.addf %15, %17 : vector<4x128xf32>
    %c0_15 = arith.constant 0 : index
    %c0_16 = arith.constant 0 : index
    %19 = vector.load %arg8[%c0_15, %c0_16] : memref<4x128xf32, #tpu.memory_space<vmem>>, vector<4x128xf32>
    tpu.vector_store %arg8[%c0_15, %c0_16], %18 {strides = array<i32>} : memref<4x128xf32, #tpu.memory_space<vmem>>, vector<4x128xf32>,
    return
  }
  func.func @transform_0(%arg0: i32) -> (i32, i32) {
    %c0_i32 = arith.constant 0 : i32
    %c0_i32_0 = arith.constant 0 : i32
    return %c0_i32, %arg0 : i32, i32
  }
  func.func @transform_1(%arg0: i32) -> (i32, i32) {
    %c0_i32 = arith.constant 0 : i32
    %c0_i32_0 = arith.constant 0 : i32
    %c0_i32_1 = arith.constant 0 : i32
    return %c0_i32, %c0_i32_0 : i32, i32
  }
  func.func @transform_2(%arg0: i32) -> (i32, i32) {
    %c0_i32 = arith.constant 0 : i32
    %c0_i32_0 = arith.constant 0 : i32
    %c0_i32_1 = arith.constant 0 : i32
    return %c0_i32, %c0_i32_0 : i32, i32
  }
  func.func @transform_3(%arg0: i32) -> (i32, i32) {
    %c0_i32 = arith.constant 0 : i32
    %c0_i32_0 = arith.constant 0 : i32
    %c0_i32_1 = arith.constant 0 : i32
    return %c0_i32, %c0_i32_0 : i32, i32
  }
  func.func @transform_4(%arg0: i32) -> (i32, i32) {
    %c0_i32 = arith.constant 0 : i32
    %c0_i32_0 = arith.constant 0 : i32
    %c0_i32_1 = arith.constant 0 : i32
    return %c0_i32, %c0_i32_0 : i32, i32
  }
  func.func @transform_5(%arg0: i32) -> (i32, i32) {
    %c0_i32 = arith.constant 0 : i32
    %c0_i32_0 = arith.constant 0 : i32
    %c0_i32_1 = arith.constant 0 : i32
    return %c0_i32, %c0_i32_0 : i32, i32
  }
  func.func @transform_6(%arg0: i32) -> (i32, i32) {
    %c0_i32 = arith.constant 0 : i32
    %c0_i32_0 = arith.constant 0 : i32
    %c0_i32_1 = arith.constant 0 : i32
    return %c0_i32, %c0_i32_0 : i32, i32
  }
  func.func @transform_7(%arg0: i32) -> (i32, i32) {
    %c0_i32 = arith.constant 0 : i32
    %c0_i32_0 = arith.constant 0 : i32
    return %c0_i32, %arg0 : i32, i32
  }
}

</mosaic_0001>

<bundles_post_ra>
// kernel: mlp_forward.1
= control target key start
LH: loop header
LB: loop body
LE: loop exit
PB: predicated region body
PF: predicated region fallthrough
CT: control target
= control target key end

     0   :  { %vm84_vm0 = vcmask 130048   ;;  %v661_v3 = vmov 0   ;;  %vm278_vm1 = vcmask 523264   ;;  %vm663_vm2 = vmmov 0   ;;  %s841_s0 = inlined_call_operand.vmem [shape: f32[16,128], index: 0, kind: input, shape index: {}]   ;;  %s842_s1 = inlined_call_operand.vmem [shape: f32[64,16], index: 1, kind: input, shape index: {}]   ;;  %s843_s2 = inlined_call_operand.vmem [shape: f32[64,1], index: 2, kind: input, shape index: {}]   ;;  %s844_s4 = inlined_call_operand.vmem [shape: f32[64,1], index: 4, kind: input, shape index: {}]   ;;  %s845_s6 = inlined_call_operand.vmem [shape: f32[4,1], index: 6, kind: input, shape index: {}]   ;;  %s846_s3 = inlined_call_operand.vmem [shape: f32[64,64], index: 3, kind: input, shape index: {}]   ;;  %s847_s5 = inlined_call_operand.vmem [shape: f32[4,64], index: 5, kind: input, shape index: {}]   ;;  %s848_s7 = inlined_call_operand.vmem [shape: f32[4,128], index: 7, kind: output, shape index: {}]  }
   0x1   :  { %v27_v0 = vld [vmem:[%s841_s0 + $0x8] sm:$0xff]  ;;  %v26_v1 = vld [vmem:[%s841_s0] sm:$0xff]  ;;  %627 = vset.pattern.permute.xlu0 %v661_v3  ;;  %628 = vset.pattern.permute.xlu1 %v661_v3  ;;  %v30_v5 = vld [vmem:[%s842_s1 + $0x10] sm:$0xff] }
   0x2   :  { %v28_v2 = vld [vmem:[%s842_s1] sm:$0xff]  ;;  %561 = vmatprep.subr.mxu0 %v27_v0  ;;  %v29_v4 = vld [vmem:[%s842_s1 + $0x8] sm:$0xff]  ;;  %v43_v6 = vld [vmem:[%s843_s2 + $0x38] sm:$0xff] }
   0x3   :  { %565 = vmatprep.mubr.msk.f32.mxu0 %vm84_vm0, %v28_v2  ;;  %562 = vmatpush3.msra.mxu0 %v27_v0  ;;  %v41_v7 = vld [vmem:[%s843_s2 + $0x28] sm:$0xff]  ;;  %v42_v8 = vld [vmem:[%s843_s2 + $0x30] sm:$0xff]  ;;  %v31_v9 = vld [vmem:[%s842_s1 + $0x18] sm:$0xff] }
   0x4   :  { %563 = vmatprep.subr.mxu0 %v26_v1  ;;  %81 = vperm.xlu0 %627, %v43_v6   ;;  %v40_v10 = vld [vmem:[%s843_s2 + $0x20] sm:$0xff]  ;;  %v39_v12 = vld [vmem:[%s843_s2 + $0x18] sm:$0xff]  ;;  %v33_v13 = vld [vmem:[%s842_s1 + $0x28] sm:$0xff] }
   0x5   :  { %564 = vmatpush3.msra.mxu0 %v26_v1  ;;  %71 = vperm.xlu1 %628, %v41_v7   ;;  %v32_v11 = vld [vmem:[%s842_s1 + $0x20] sm:$0xff]  ;;  %v38_v14 = vld [vmem:[%s843_s2 + $0x10] sm:$0xff]  ;;  %v37_v16 = vld [vmem:[%s843_s2 + $0x8] sm:$0xff] }
   0x6   :  { %566 = vmatmul.mubr.msk.f32.vlgmr.msra.gmra.mxu0 %vm84_vm0, %v29_v4  ;;  %v34_v15 = vld [vmem:[%s842_s1 + $0x30] sm:$0xff]  ;;  %v35_v17 = vld [vmem:[%s842_s1 + $0x38] sm:$0xff]  ;;  %v36_v18 = vld [vmem:[%s843_s2] sm:$0xff]  ;;  %v662_v4 = vmov 0.0  }
   0x7   :  { %568 = vmatprep.mubr.msk.f32.mxu0 %vm84_vm0, %v30_v5  ;;  %v237_v19 = vld [vmem:[%s844_s4 + $0x38] sm:$0xff]  ;;  %v236_v20 = vld [vmem:[%s844_s4 + $0x30] sm:$0xff]  ;;  %v235_v21 = vld [vmem:[%s844_s4 + $0x28] sm:$0xff]  ;;  %605 = vmatprep.subr.mxu0 %v662_v4 }
   0x8   :  { %76 = vperm.xlu0 %627, %v42_v8   ;;  %v234_v22 = vld [vmem:[%s844_s4 + $0x20] sm:$0xff]  ;;  %v233_v23 = vld [vmem:[%s844_s4 + $0x18] sm:$0xff]  ;;  %v232_v24 = vld [vmem:[%s844_s4 + $0x10] sm:$0xff] }
   0x9   :  { %66 = vperm.xlu1 %628, %v40_v10   ;;  %v231_v25 = vld [vmem:[%s844_s4 + $0x8] sm:$0xff]  ;;  %v230_v26 = vld [vmem:[%s844_s4] sm:$0xff]  ;;  %v224_v62 = vld [vmem:[%s846_s3 + $0x10] sm:$0xff] }
   0xa   :  { %569 = vmatmul.mubr.msk.f32.gmra.mxu0 %vm84_vm0, %v31_v9  ;;  %v425_v27 = vld [vmem:[%s845_s6] sm:$0xf]  ;;  %v223_v61 = vld [vmem:[%s846_s3 + $0x8] sm:$0xff]  ;;  %v225_v63 = vld [vmem:[%s846_s3 + $0x18] sm:$0xff] }
   0xb   :  { %571 = vmatprep.mubr.msk.f32.mxu0 %vm84_vm0, %v32_v11  ;;  %v222_v28 = vld [vmem:[%s846_s3] sm:$0xff]  ;;  %v227_v1 = vld [vmem:[%s846_s3 + $0x28] sm:$0xff]  ;;  %v228_v2 = vld [vmem:[%s846_s3 + $0x30] sm:$0xff] }
   0xc   :  { %61 = vperm.xlu0 %627, %v39_v12   ;;  %593 = vmatprep.mubr.msk.f32.mxu1 %vm278_vm1, %v222_v28  ;;  %v226_v0 = vld [vmem:[%s846_s3 + $0x20] sm:$0xff]  ;;  %v229_v3 = vld [vmem:[%s846_s3 + $0x38] sm:$0xff] }
   0xd   :  { %56 = vperm.xlu1 %628, %v38_v14  }
   0xe   :  { %572 = vmatmul.mubr.msk.f32.gmra.mxu0 %vm84_vm0, %v33_v13 }
   0xf   :  { %574 = vmatprep.mubr.msk.f32.mxu0 %vm84_vm0, %v34_v15 }
  0x10   :  { %51 = vperm.xlu0 %627, %v37_v16  }
  0x11   :  { %46 = vperm.xlu1 %628, %v36_v18  }
  0x12   :  { %575 = vmatmul.mubr.msk.f32.gmra.mxu0 %vm84_vm0, %v35_v17 }
  0x13   :  { %621 = vmatprep.mubr.msk.f32.mxu0 %vm663_vm2, %v662_v4 }
  0x14   :  { %275 = vperm.xlu0 %627, %v237_v19  }
  0x15   :  { %270 = vperm.xlu1 %628, %v236_v20  }
  0x18   :  { %265 = vperm.xlu0 %627, %v235_v21  }
  0x19   :  { %260 = vperm.xlu1 %628, %v234_v22  }
  0x1c   :  { %255 = vperm.xlu0 %627, %v233_v23  }
  0x1d   :  { %250 = vperm.xlu1 %628, %v232_v24  }
  0x20   :  { %245 = vperm.xlu0 %627, %v231_v25  }
  0x21   :  { %240 = vperm.xlu1 %628, %v230_v26  }
  0x24   :  { %428 = vperm.xlu0 %627, %v425_v27  }
  0x7f   :  { %v82_v31 = vpop.permute.xlu0 %81 }
  0x80   :  { %v72_v33 = vpop.permute.xlu1 %71 }
  0x83   :  { %v77_v36 = vpop.permute.xlu0 %76 }
  0x84   :  { %v67_v38 = vpop.permute.xlu1 %66 }
  0x87   :  { %v62_v44 = vpop.permute.xlu0 %61 }
  0x88   :  { %v57_v46 = vpop.permute.xlu1 %56 }
  0x8b   :  { %v52_v49 = vpop.permute.xlu0 %51 }
  0x8c   :  { %v47_v51 = vpop.permute.xlu1 %46 }
  0x8f   :  { %v276_v6 = vpop.permute.xlu0 %275 }
  0x90   :  { %v271_v8 = vpop.permute.xlu1 %270 }
  0x93   :  { %v266_v11 = vpop.permute.xlu0 %265 }
  0x94   :  { %v261_v13 = vpop.permute.xlu1 %260 }
  0x97   :  { %v256_v18 = vpop.permute.xlu0 %255 }
  0x98   :  { %v251_v23 = vpop.permute.xlu1 %250 }
  0xc6   :  { %v567_v29 = vpop.f32.mrf.mxu0 }
  0xc7   :  { %v181_v50 = vadd.f32 %v567_v29, %v52_v49  ;;  %v246_v29 = vpop.permute.xlu0 %245 }
  0xc8   :  { %v175_v30 = vpop.f32.mrf.mxu0 }
  0xc9   :  { %v176_v52 = vadd.f32 %v175_v30, %v47_v51 }
  0xca   :  { %v570_v32 = vpop.f32.mrf.mxu0 }
  0xcb   :  { %v191_v47 = vadd.f32 %v570_v32, %v62_v44  ;;  %v241_v32 = vpop.permute.xlu1 %240  ;;  %v424_v44 = vld [vmem:[%s847_s5] sm:$0xf] }
  0xcc   :  { %v185_v34 = vpop.f32.mrf.mxu0 }
  0xcd   :  { %v186_v48 = vadd.f32 %v185_v34, %v57_v46  ;;  %v429_v46 = vpop.permute.xlu0 %428 }
  0xce   :  { %v573_v35 = vpop.f32.mrf.mxu0 }
  0xcf   :  { %v201_v42 = vadd.f32 %v573_v35, %v72_v33 }
  0xd0   :  { %v195_v37 = vpop.f32.mrf.mxu0 }
  0xd1   :  { %v196_v45 = vadd.f32 %v195_v37, %v67_v38 }
  0xd2   :  { %v576_v39 = vpop.f32.mrf.mxu0 }
  0xd3   :  { %v211_v40 = vadd.f32 %v576_v39, %v82_v31 }
  0xd4   :  { %v205_v41 = vpop.f32.mrf.mxu0 }
  0xd5   :  { %629 = vtanh.f32 %v211_v40  ;;  %v206_v43 = vadd.f32 %v205_v41, %v77_v36 }
  0xd7   :  { %631 = vtanh.f32 %v206_v43 }
  0xd8   :  { %633 = vtanh.f32 %v201_v42 }
  0xd9   :  { %635 = vtanh.f32 %v196_v45 }
  0xda   :  { %637 = vtanh.f32 %v191_v47 }
  0xdb   :  { %639 = vtanh.f32 %v186_v48 }
  0xdc   :  { %641 = vtanh.f32 %v181_v50 }
  0xdd   :  { %643 = vtanh.f32 %v176_v52 }
  0xe2   :  { %v630_v53 = vpop.eup %629 }
  0xe3   :  { %577 = vmatprep.subr.mxu1 %v630_v53 }
  0xe4   :  { %v632_v54 = vpop.eup %631  ;;  %578 = vmatpush3.msra.mxu1 %v630_v53 }
  0xe5   :  { %579 = vmatprep.subr.mxu1 %v632_v54  ;;  %v634_v55 = vpop.eup %633 }
  0xe6   :  { %580 = vmatpush3.msra.mxu1 %v632_v54  ;;  %v636_v56 = vpop.eup %635 }
  0xe7   :  { %581 = vmatprep.subr.mxu1 %v634_v55  ;;  %v638_v57 = vpop.eup %637 }
  0xe8   :  { %582 = vmatpush3.msra.mxu1 %v634_v55  ;;  %v640_v58 = vpop.eup %639 }
  0xe9   :  { %583 = vmatprep.subr.mxu1 %v636_v56  ;;  %v642_v59 = vpop.eup %641 }
  0xea   :  { %584 = vmatpush3.msra.mxu1 %v636_v56  ;;  %v644_v60 = vpop.eup %643 }
  0xeb   :  { %585 = vmatprep.subr.mxu1 %v638_v57 }
  0xec   :  { %586 = vmatpush3.msra.mxu1 %v638_v57 }
  0xed   :  { %587 = vmatprep.subr.mxu1 %v640_v58 }
  0xee   :  { %588 = vmatpush3.msra.mxu1 %v640_v58 }
  0xef   :  { %589 = vmatprep.subr.mxu1 %v642_v59 }
  0xf0   :  { %590 = vmatpush3.msra.mxu1 %v642_v59 }
  0xf1   :  { %591 = vmatprep.subr.mxu1 %v644_v60 }
  0xf2   :  { %592 = vmatpush3.msra.mxu1 %v644_v60 }
  0xf3   :  { %594 = vmatmul.mubr.msk.f32.vlgmr.msra.gmra.mxu1 %vm278_vm1, %v223_v61 }
  0xf4   :  { %596 = vmatprep.mubr.msk.f32.mxu1 %vm278_vm1, %v224_v62 }
  0xf7   :  { %597 = vmatmul.mubr.msk.f32.gmra.mxu1 %vm278_vm1, %v225_v63 }
  0xf8   :  { %599 = vmatprep.mubr.msk.f32.mxu1 %vm278_vm1, %v226_v0 }
  0xfb   :  { %600 = vmatmul.mubr.msk.f32.gmra.mxu1 %vm278_vm1, %v227_v1 }
  0xfc   :  { %602 = vmatprep.mubr.msk.f32.mxu1 %vm278_vm1, %v228_v2 }
  0xff   :  { %603 = vmatmul.mubr.msk.f32.gmra.mxu1 %vm278_vm1, %v229_v3 }
 0x1b3   :  { %v595_v5 = vpop.f32.mrf.mxu1 }
 0x1b4   :  { %v375_v30 = vadd.f32 %v595_v5, %v246_v29 }
 0x1b5   :  { %v369_v7 = vpop.f32.mrf.mxu1 }
 0x1b6   :  { %v370_v33 = vadd.f32 %v369_v7, %v241_v32  ;;  %v409_v35 = vadd.f32 %v642_v59, %v375_v30 }
 0x1b7   :  { %v598_v9 = vpop.f32.mrf.mxu1 }
 0x1b8   :  { %v385_v24 = vadd.f32 %v598_v9, %v256_v18  ;;  %v408_v36 = vadd.f32 %v644_v60, %v370_v33 }
 0x1b9   :  { %v379_v10 = vpop.f32.mrf.mxu1 }
 0x1ba   :  { %v380_v27 = vadd.f32 %v379_v10, %v251_v23  ;;  %v411_v31 = vadd.f32 %v638_v57, %v385_v24 }
 0x1bb   :  { %v601_v12 = vpop.f32.mrf.mxu1 }
 0x1bc   :  { %v395_v16 = vadd.f32 %v601_v12, %v266_v11  ;;  %v410_v34 = vadd.f32 %v640_v58, %v380_v27 }
 0x1bd   :  { %v389_v14 = vpop.f32.mrf.mxu1 }
 0x1be   :  { %v390_v20 = vadd.f32 %v389_v14, %v261_v13  ;;  %v413_v25 = vadd.f32 %v634_v55, %v395_v16 }
 0x1bf   :  { %v604_v15 = vpop.f32.mrf.mxu1 }
 0x1c0   :  { %v405_v17 = vadd.f32 %v604_v15, %v276_v6  ;;  %v412_v28 = vadd.f32 %v636_v56, %v390_v20 }
 0x1c1   :  { %v399_v19 = vpop.f32.mrf.mxu1 }
 0x1c2   :  { %v415_v21 = vadd.f32 %v630_v53, %v405_v17  ;;  %v400_v22 = vadd.f32 %v399_v19, %v271_v8 }
 0x1c4   :  { %645 = vtanh.f32 %v415_v21  ;;  %v414_v26 = vadd.f32 %v632_v54, %v400_v22 }
 0x1c6   :  { %647 = vtanh.f32 %v414_v26 }
 0x1c7   :  { %649 = vtanh.f32 %v413_v25 }
 0x1c8   :  { %651 = vtanh.f32 %v412_v28 }
 0x1c9   :  { %653 = vtanh.f32 %v411_v31 }
 0x1ca   :  { %655 = vtanh.f32 %v410_v34 }
 0x1cb   :  { %657 = vtanh.f32 %v409_v35 }
 0x1cc   :  { %659 = vtanh.f32 %v408_v36 }
 0x1d1   :  { %v646_v37 = vpop.eup %645 }
 0x1d2   :  { %606 = vmatpush3.msra.mxu0 %v646_v37 }
 0x1d3   :  { %v648_v38 = vpop.eup %647  ;;  %607 = vmatprep.subr.mxu0 %v662_v4 }
 0x1d4   :  { %608 = vmatpush3.msra.mxu0 %v648_v38  ;;  %v650_v39 = vpop.eup %649 }
 0x1d5   :  { %609 = vmatprep.subr.mxu0 %v662_v4  ;;  %v652_v40 = vpop.eup %651 }
 0x1d6   :  { %610 = vmatpush3.msra.mxu0 %v650_v39  ;;  %v654_v41 = vpop.eup %653 }
 0x1d7   :  { %611 = vmatprep.subr.mxu0 %v662_v4  ;;  %v656_v42 = vpop.eup %655 }
 0x1d8   :  { %612 = vmatpush3.msra.mxu0 %v652_v40  ;;  %v658_v43 = vpop.eup %657 }
 0x1d9   :  { %613 = vmatprep.subr.mxu0 %v662_v4  ;;  %v660_v45 = vpop.eup %659 }
 0x1da   :  { %614 = vmatpush3.msra.mxu0 %v654_v41 }
 0x1db   :  { %615 = vmatprep.subr.mxu0 %v662_v4 }
 0x1dc   :  { %616 = vmatpush3.msra.mxu0 %v656_v42 }
 0x1dd   :  { %617 = vmatprep.subr.mxu0 %v662_v4 }
 0x1de   :  { %618 = vmatpush3.msra.mxu0 %v658_v43 }
 0x1df   :  { %619 = vmatprep.subr.mxu0 %v662_v4 }
 0x1e0   :  { %620 = vmatpush3.msra.mxu0 %v660_v45 }
 0x1e1   :  { %622 = vmatmul.mubr.msk.f32.vlgmr.msra.gmra.mxu0 %vm278_vm1, %v424_v44 }
 0x2a1   :  { %v500_v47 = vpop.f32.mrf.mxu0 }
 0x2a2   :  { %v501_v48 = vadd.f32 %v500_v47, %v429_v46 }
 0x2a3   :  { %v623_v49 = vpop.f32.mrf.mxu0 }
 0x2a4   :  { %504 = vst [vmem:[%s848_s7] sm:$0xf] %v501_v48 }

</bundles_post_ra>
